<compile_context>
chip_gen: v7x
topology: tpu7x:2x2x1
jax: 0.10.0
libtpu: 0.0.40
codegen_flags: <defaults>
</compile_context>

<pallas_src>
import functools

import jax
import jax.numpy as jnp
from jax.experimental import pallas as pl
from jax.experimental.pallas import tpu as pltpu


def _round_up(n, m):
    return ((n + m - 1) // m) * m


def _round_down(n, m):
    return (n // m) * m


def _tpu_generation():
    """Best-effort TPU generation (5/6/7); conservative default is 5."""
    try:
        kind = jax.devices()[0].device_kind.lower().replace(" ", "")
        for g in (7, 6, 5, 4, 3):
            if f"v{g}" in kind or f"tpu{g}" in kind:
                return g
    except Exception:
        pass
    return 5


def _vmem_capacity_bytes(gen):
    try:
        return int(pltpu.get_tpu_info().vmem_capacity_bytes)
    except Exception:
        # v7x has 64 MiB per TensorCore, earlier generations 128 MiB.
        return (64 << 20) if gen >= 7 else (128 << 20)


# --------------------------------------------------------------------------- #
# Kernel body (shared by both paths).  Refs:
#   x_ref: (T, C)   lane chunk (C feature / fused batch*feature columns)
#   w_ref: (T', T)  Linear weight in PyTorch [out, in] layout (resident)
#   b_ref: (T', 1)  bias, f32 (resident)
#   o_ref: (T, C)
# --------------------------------------------------------------------------- #
def _decoder_attn_kernel(x_ref, w_ref, b_ref, o_ref, *, low_precision_mul):
    x = x_ref[...]                                   # native dtype -> MXU operand
    # logits[t', c] = sum_t W[t', t] * x[t, c] + b[t']   (f32 accumulation on MXU)
    logits = jnp.dot(w_ref[...], x, preferred_element_type=jnp.float32) + b_ref[...]

    # Softmax over T' (axis 0) == PyTorch softmax over the last dim of (B, F, T').
    m = jnp.max(logits, axis=0, keepdims=True)
    e = jnp.exp(logits - m)
    inv = pl.reciprocal(jnp.sum(e, axis=0, keepdims=True), approx=False)  # exact
    attn = e * inv                                   # (T, C) f32

    if low_precision_mul:
        # v6e/v7x: bf16 VALU -> multiply in the input dtype, no full-tile upcast.
        o_ref[...] = x * attn.astype(x.dtype)
    else:
        # v5e (no bf16 VPU) or f32 inputs: multiply in f32.
        o_ref[...] = (x.astype(jnp.float32) * attn).astype(o_ref.dtype)


# --------------------------------------------------------------------------- #
# VMEM accounting / tile sizing
# --------------------------------------------------------------------------- #
def _vmem_block_bytes(T, fc, x_itemsize, w_itemsize):
    io = 2 * 2 * T * fc * x_itemsize                  # double-buffered input + output blocks
    resident = 2 * (T * T * w_itemsize + T * 4)       # weight + bias (constant index map, 2x buffered)
    temps = 5 * T * fc * 4 + 2 * fc * 4               # f32 logits / exp / attn / casts + row stats
    return io + resident + temps


def _pick_lane_chunk(T, lanes, x_itemsize, w_itemsize, budget, gen, min_chunks):
    """Largest lane chunk (multiple of 128/256) that fits the VMEM budget."""
    lane_mult = 256 if (gen >= 6 and lanes >= 256) else 128   # v6e/v7x MXU is 2x256^2
    fc_cap = 1024 if budget <= (48 << 20) else 2048           # smaller cap under v7x's 64 MiB VMEM
    fc = min(_round_up(lanes, lane_mult), fc_cap)
    fc = max(_round_down(fc, lane_mult), lane_mult)
    # Guarantee enough grid steps for megacore sharding (v7x) when lanes allow it.
    if min_chunks > 1 and lanes >= min_chunks * lane_mult:
        fc = min(fc, max(_round_down(lanes // min_chunks, lane_mult), lane_mult))
    # Shrink the chunk (not the limit) until the properly-counted footprint fits.
    while fc > lane_mult and _vmem_block_bytes(T, fc, x_itemsize, w_itemsize) > budget:
        fc -= lane_mult
    return fc


# --------------------------------------------------------------------------- #
# Wrapper
# --------------------------------------------------------------------------- #
def decoder_attention_layer(x, weight, bias):
    """x: (B, T, F), weight: (T, T) [out, in], bias: (T,) -> (B, T, F)."""
    B, T, F = x.shape
    gen = _tpu_generation()
    capacity = _vmem_capacity_bytes(gen)
    budget = (capacity * 3) // 4          # ~48 MiB on v7x, ~96 MiB on v5e/v6e

    w = weight.astype(x.dtype)            # matched MXU operands; accumulate in f32 in-kernel
    b = bias.astype(jnp.float32).reshape(T, 1)
    x_itemsize = jnp.dtype(x.dtype).itemsize
    w_itemsize = jnp.dtype(w.dtype).itemsize
    low_precision_mul = (gen >= 6) and (x.dtype == jnp.bfloat16)
    kernel = functools.partial(_decoder_attn_kernel, low_precision_mul=low_precision_mul)

    min_total_steps = 2 if gen >= 7 else 1   # keep both v7x TensorCores busy

    if F % 128 == 0:
        # -------- primary path: no layout transposes, F already the lane axis --------
        min_chunks = 1 if B >= min_total_steps else min_total_steps
        fc = _pick_lane_chunk(T, F, x_itemsize, w_itemsize, budget, gen, min_chunks)
        required = _vmem_block_bytes(T, fc, x_itemsize, w_itemsize)
        vmem_limit = int(min(max(budget, required), capacity))
        return pl.pallas_call(
            kernel,
            out_shape=jax.ShapeDtypeStruct((B, T, F), x.dtype),
            grid=(B, pl.cdiv(F, fc)),
            in_specs=[
                pl.BlockSpec((None, T, fc), lambda bi, fi: (bi, 0, fi)),  # x chunk
                pl.BlockSpec((T, T), lambda bi, fi: (0, 0)),              # weight, resident
                pl.BlockSpec((T, 1), lambda bi, fi: (0, 0)),              # bias,   resident
            ],
            out_specs=pl.BlockSpec((None, T, fc), lambda bi, fi: (bi, 0, fi)),
            compiler_params=pltpu.CompilerParams(
                dimension_semantics=("parallel", "parallel"),
                vmem_limit_bytes=vmem_limit,
            ),
        )(x, w, b)

    # -------- fallback: small / non-128-multiple F -> fuse batch & feature lanes --------
    N = B * F
    fc = _pick_lane_chunk(T, max(N, 128), x_itemsize, w_itemsize, budget, gen, min_total_steps)
    n_pad = _round_up(max(N, fc), fc)
    xt = jnp.transpose(x, (1, 0, 2)).reshape(T, N)
    if n_pad != N:
        # Zero columns: logits == bias there, softmax stays finite, out == 0 (sliced away).
        xt = jnp.pad(xt, ((0, 0), (0, n_pad - N)))
    num_chunks = n_pad // fc
    required = _vmem_block_bytes(T, fc, x_itemsize, w_itemsize)
    vmem_limit = int(min(max(budget, required), capacity))

    out_t = pl.pallas_call(
        kernel,
        out_shape=jax.ShapeDtypeStruct((T, n_pad), x.dtype),
        grid=(num_chunks,),
        in_specs=[
            pl.BlockSpec((T, fc), lambda j: (0, j)),
            pl.BlockSpec((T, T), lambda j: (0, 0)),
            pl.BlockSpec((T, 1), lambda j: (0, 0)),
        ],
        out_specs=pl.BlockSpec((T, fc), lambda j: (0, j)),
        compiler_params=pltpu.CompilerParams(
            dimension_semantics=("parallel",),
            vmem_limit_bytes=vmem_limit,
        ),
    )(xt, w, b)

    out = out_t[:, :N].reshape(T, B, F)
    return jnp.transpose(out, (1, 0, 2))


# --------------------------------------------------------------------------- #
# Reference + test
# --------------------------------------------------------------------------- #
def _reference(x, weight, bias):
    # Pure-JAX mirror of the PyTorch forward for validation.
    x_p = jnp.transpose(x, (0, 2, 1))                                     # (B, F, T)
    attn = jnp.einsum("bft,ut->bfu", x_p, weight,
                      precision=jax.lax.Precision.HIGHEST) + bias         # (B, F, T')
    attn = jax.nn.softmax(attn, axis=-1)
    attn = jnp.transpose(attn, (0, 2, 1))                                 # (B, T', F)
    return x * attn


if __name__ == "__main__":
    key = jax.random.PRNGKey(0)
    kx1, kx2, kw, kb = jax.random.split(key, 4)

    # Shapes implied by the module: (batch, time_steps, features).
    B, T = 2, 8
    bound = 1.0 / (T ** 0.5)      # deterministic synthetic init for LazyLinear(T)
    weight = jax.random.uniform(kw, (T, T), jnp.float32, -bound, bound)
    bias = jax.random.uniform(kb, (T,), jnp.float32, -bound, bound)

    # Primary (transpose-free) path: feature dim is a lane multiple.
    x1 = jax.random.normal(kx1, (B, T, 128), dtype=jnp.float32)
    out1 = jax.block_until_ready(decoder_attention_layer(x1, weight, bias))
    assert out1.shape == x1.shape and out1.dtype == x1.dtype
    assert jnp.allclose(out1, _reference(x1, weight, bias), atol=2e-3, rtol=2e-3), \
        "direct-path mismatch vs reference"

    # Fallback (fused batch*feature lanes) path: small, non-128-multiple feature dim.
    x2 = jax.random.normal(kx2, (B, T, 32), dtype=jnp.float32)
    out2 = jax.block_until_ready(decoder_attention_layer(x2, weight, bias))
    assert out2.shape == x2.shape and out2.dtype == x2.dtype
    assert jnp.allclose(out2, _reference(x2, weight, bias), atol=2e-3, rtol=2e-3), \
        "fallback-path mismatch vs reference"

    print("KERNEL_OK")
</pallas_src>

<mosaic_0001>
module attributes {stable_mosaic.version = 11 : i64} {
  func.func @_decoder_attn_kernel(%arg0: i32, %arg1: i32, %arg2: memref<1x8x128xf32, #tpu.memory_space<vmem>>, %arg3: memref<8x8xf32, #tpu.memory_space<vmem>>, %arg4: memref<8x1xf32, #tpu.memory_space<vmem>>, %arg5: memref<1x8x128xf32, #tpu.memory_space<vmem>>) attributes {dimension_semantics = [#tpu.dimension_semantics<parallel>, #tpu.dimension_semantics<parallel>], iteration_bounds = array<i64: 2, 1>, scalar_prefetch = 0 : i64, scratch_operands = 0 : i64, tpu.core_type = #tpu.core_type<tc>, window_params = [{transform_indices = @transform_0, window_bounds = array<i64: 1, 8, 128>}, {pipeline_mode = #tpu.pipeline_mode<synchronous>, transform_indices = @transform_1, window_bounds = array<i64: 8, 8>}, {pipeline_mode = #tpu.pipeline_mode<synchronous>, transform_indices = @transform_2, window_bounds = array<i64: 8, 1>}, {transform_indices = @transform_3, window_bounds = array<i64: 1, 8, 128>}]} {
    %c0 = arith.constant 0 : index
    %c0_0 = arith.constant 0 : index
    %c0_1 = arith.constant 0 : index
    %0 = vector.load %arg2[%c0, %c0_0, %c0_1] : memref<1x8x128xf32, #tpu.memory_space<vmem>>, vector<1x8x128xf32>
    %1 = vector.shape_cast %0 : vector<1x8x128xf32> to vector<8x128xf32>
    %c0_2 = arith.constant 0 : index
    %c0_3 = arith.constant 0 : index
    %2 = vector.load %arg3[%c0_2, %c0_3] : memref<8x8xf32, #tpu.memory_space<vmem>>, vector<8x8xf32>
    %cst = arith.constant dense<0.000000e+00> : vector<8x128xf32>
    %3 = tpu.matmul %2, %1, %cst {dimension_numbers = #tpu.dot_dimension_numbers<[1], [0], [0], [1], [0, 0, 1, 1], [], []>} : vector<8x8xf32>, vector<8x128xf32>, vector<8x128xf32> -> vector<8x128xf32>
    %c0_4 = arith.constant 0 : index
    %c0_5 = arith.constant 0 : index
    %4 = vector.load %arg4[%c0_4, %c0_5] : memref<8x1xf32, #tpu.memory_space<vmem>>, vector<8x1xf32>
    %5 = vector.broadcast %4 : vector<8x1xf32> to vector<8x128xf32>
    %6 = arith.addf %3, %5 : vector<8x128xf32>
    %cst_6 = arith.constant dense<0xFF800000> : vector<128xf32>
    %7 = vector.multi_reduction <maximumf>, %6, %cst_6 [0] : vector<8x128xf32> to vector<128xf32>
    %8 = vector.shape_cast %7 : vector<128xf32> to vector<1x128xf32>
    %9 = vector.broadcast %8 : vector<1x128xf32> to vector<8x128xf32>
    %10 = arith.subf %6, %9 : vector<8x128xf32>
    %11 = math.exp %10 : vector<8x128xf32>
    %cst_7 = arith.constant dense<0.000000e+00> : vector<128xf32>
    %12 = vector.multi_reduction <add>, %11, %cst_7 [0] : vector<8x128xf32> to vector<128xf32>
    %13 = vector.shape_cast %12 : vector<128xf32> to vector<1x128xf32>
    %14 = tpu.reciprocal %13 : vector<1x128xf32> -> vector<1x128xf32>
    %15 = vector.broadcast %14 : vector<1x128xf32> to vector<8x128xf32>
    %16 = arith.mulf %11, %15 : vector<8x128xf32>
    %17 = arith.mulf %1, %16 : vector<8x128xf32>
    %c0_8 = arith.constant 0 : index
    %c0_9 = arith.constant 0 : index
    %c0_10 = arith.constant 0 : index
    %18 = vector.load %arg5[%c0_8, %c0_9, %c0_10] : memref<1x8x128xf32, #tpu.memory_space<vmem>>, vector<1x8x128xf32>
    %19 = vector.shape_cast %18 : vector<1x8x128xf32> to vector<8x128xf32>
    %20 = vector.shape_cast %17 : vector<8x128xf32> to vector<1x8x128xf32>
    tpu.vector_store %arg5[%c0_8, %c0_9, %c0_10], %20 {strides = array<i32>} : memref<1x8x128xf32, #tpu.memory_space<vmem>>, vector<1x8x128xf32>,
    return
  }
  func.func @transform_0(%arg0: i32, %arg1: i32) -> (i32, i32, i32) {
    %c0_i32 = arith.constant 0 : i32
    %c0_i32_0 = arith.constant 0 : i32
    return %arg0, %c0_i32, %arg1 : i32, i32, i32
  }
  func.func @transform_1(%arg0: i32, %arg1: i32) -> (i32, i32) {
    %c0_i32 = arith.constant 0 : i32
    %c0_i32_0 = arith.constant 0 : i32
    %c0_i32_1 = arith.constant 0 : i32
    return %c0_i32, %c0_i32_0 : i32, i32
  }
  func.func @transform_2(%arg0: i32, %arg1: i32) -> (i32, i32) {
    %c0_i32 = arith.constant 0 : i32
    %c0_i32_0 = arith.constant 0 : i32
    %c0_i32_1 = arith.constant 0 : i32
    return %c0_i32, %c0_i32_0 : i32, i32
  }
  func.func @transform_3(%arg0: i32, %arg1: i32) -> (i32, i32, i32) {
    %c0_i32 = arith.constant 0 : i32
    %c0_i32_0 = arith.constant 0 : i32
    return %arg0, %c0_i32, %arg1 : i32, i32, i32
  }
}

</mosaic_0001>

<bundles_post_ra>
// kernel: tpu_custom_call.1
= control target key start
LH: loop header
LB: loop body
LE: loop exit
PB: predicated region body
PF: predicated region fallthrough
CT: control target
= control target key end

     0   :  { %8 = vsyncpa [#allocation3], 0  ;;  %s1007_s0 = inlined_call_operand.hbm [shape: f32[2,8,128], index: 0, kind: input, shape index: {}]   ;;  %s1008_s1 = inlined_call_operand.hbm [shape: f32[8,8], index: 1, kind: input, shape index: {}]   ;;  %s1009_s2 = inlined_call_operand.hbm [shape: f32[8,1], index: 2, kind: input, shape index: {}]   ;;  %s1010_s3 = inlined_call_operand.hbm [shape: f32[2,8,128], index: 3, kind: output, shape index: {}]  }
   0x1   :  { %10 = vsyncpa [#allocation3 + $0x1], 0 }
   0x2   :  { %11 = vsyncpa [#allocation6], 0 }
   0x3   :  { %12 = vsyncpa [#allocation4], 0 }
   0x4   :  { %14 = vsyncpa [#allocation4 + $0x1], 0  ;;  %s760_s12 = smov 0   ;;  %s762_s13 = smov 0  }
   0x5   :  { %s764_s14 = smov 0   ;;  %s766_s15 = smov 0  }
   0x6   :  { %s768_s16 = smov 0   ;;  %s770_s17 = smov 0  }
   0x7 LB: > { %s443_s18 = sadd.s32 4294967295, %s731_s17   ;;  %s444_s19 = sadd.s32 4294967294, %s731_s17   ;;  %s731_s17 = sphi %s770_s17, %s20_s17   ;;  %s727_s16 = sphi %s768_s16, %s1033_s16   ;;  %s723_s15 = sphi %s766_s15, %s1032_s15   ;;  %s719_s14 = sphi %s764_s14, %s1031_s14   ;;  %s715_s13 = sphi %s762_s13, %s1030_s13   ;;  %s711_s12 = sphi %s760_s12, %s1029_s12  }
   0x8   : > { %p54_p0 = scmp.ne.s32.totalorder %s715_s13, %s711_s12  ;;  %p794_p1 = scmp.eq.s32.totalorder %s443_s18, 0 }
   0x9   : > { %p798_p2 = scmp.eq.s32.totalorder %s443_s18, 1  ;;  %p128_p3 = scmp.eq.s32.totalorder %s444_s19, 1 }
   0xa   : > { %s1015_s20 = scalar_select %p794_p1, 1, 0 }
   0xb   : > { %s1016_s21 = scalar_select %p798_p2, 1, 0 }
   0xc   : > { %p804_p4 = por %p794_p1, %p54_p0  ;;  %p445_p5 = scmp.ge.s32.totalorder %s731_s17, 1 }
   0xd   : > { %p809_p6 = por %p128_p3, %p54_p0  ;;  %p135_p7 = scmp.lt.s32.totalorder %s731_s17, 3 }
   0xe   : > { %s1017_s22 = scalar_select %p804_p4, 1, 0 }
   0xf   : > { %s1018_s23 = scalar_select %p809_p6, 1, 0 }
  0x10   : > { %p814_p8 = pnand %p445_p5, %p135_p7  ;;  %s733_s25 = smov [#allocation5]  }
  0x11   : > { %s148_s26 = sshll.u32 %s733_s25, 4  ;;  %s734_s27 = smov [#allocation7]   ;;  %s149_s26 = int_to_ptr.vmem [resolvable:$true] %s148_s26 }
  0x12   : > { %s1019_s24 = scalar_select %p814_p8, 1, 0 }
  0x13   : > { %p480_p10 = pneg %p814_p8  ;;  %s159_s28 = sshll.u32 %s734_s27, 4  ;;  %s827_s28 = int_to_ptr.vmem [resolvable:$true] %s159_s28 }
  0x14   : > { %s559_s5 = scalar_lea.hbm %s1008_s1, 128 }
  0x15   : > { %p823_p11 = pnand %p480_p10, %p794_p1  ;;  %p560_p12 = scmp.ne.s32.totalorder %s1008_s1, %s559_s5 }
  0x16   : > { %p566_p5 = scmp.lt.u32.totalorder %s559_s5, %s1008_s1 }
  0x17   : > { %p561_p13 = pneg %p823_p11 }
  0x19   : > { %p562_p0 = pnand %p561_p13, %p560_p12 }
  0x1b   : > { %p563_p3 = pneg %p562_p0 }
  0x1d   : > { %p568_p7 = pnand %p566_p5, %p563_p3 }
  0x1f   : > { %571 = shalt.err (!%p568_p7)
}
  0x20   : > { %s572_s10 = scalar_lea.vmem %s149_s26, 128  ;;  %p580_p1 = scmp.lt.s32.totalorder %s149_s26, %s149_s26 }
  0x21   : > { %p573_p10 = scmp.ne.s32.totalorder %s149_s26, %s572_s10  ;;  %p581_p4 = scmp.lt.s32.totalorder %s572_s10, %s572_s10 }
  0x23   : > { %p575_p9 = pnand %p573_p10, %p561_p13  ;;  %p582_p8 = por %p581_p4, %p580_p1 }
  0x25   : > { %p576_p6 = pneg %p575_p9 }
  0x27   : > { %p583_p2 = pnand %p582_p8, %p576_p6 }
  0x29   : > { %586 = shalt.err (!%p583_p2)
}
  0x2a   : > { %483 = dma.hbm_to_vmem [thread:$0]  (!%p823_p11), %s1008_s1, 128, %s149_s26, [#allocation6]  }
  0x2b   : > { %s587_s27 = scalar_lea.hbm %s1009_s2, 128 }
  0x2c   : > { %p588_p9 = scmp.ne.s32.totalorder %s1009_s2, %s587_s27  ;;  %p594_p2 = scmp.lt.u32.totalorder %s587_s27, %s1009_s2 }
  0x2e   : > { %p590_p1 = pnand %p588_p9, %p561_p13 }
  0x30   : > { %p591_p4 = pneg %p590_p1 }
  0x32   : > { %p596_p6 = pnand %p594_p2, %p591_p4 }
  0x34   : > { %599 = shalt.err (!%p596_p6)
}
  0x35   : > { %s600_s26 = scalar_lea.vmem %s827_s28, 128  ;;  %p608_p3 = scmp.lt.s32.totalorder %s827_s28, %s827_s28 }
  0x36   : > { %p601_p8 = scmp.ne.s32.totalorder %s827_s28, %s600_s26  ;;  %p609_p5 = scmp.lt.s32.totalorder %s600_s26, %s600_s26 }
  0x38   : > { %p603_p12 = pnand %p601_p8, %p561_p13  ;;  %p610_p7 = por %p609_p5, %p608_p3 }
  0x3a   : > { %p604_p0 = pneg %p603_p12 }
  0x3c   : > { %p611_p10 = pnand %p610_p7, %p604_p0 }
  0x3e   : > { %614 = shalt.err (!%p611_p10)
}
  0x3f   : > { %486 = dma.hbm_to_vmem [thread:$0]  (!%p823_p11), %s1009_s2, 128, %s827_s28, [#allocation6]  }
  0x40   : > { %s32_s9 = sadd.s32 1, %s727_s16  ;;  %s41_s10 = sadd.s32 1, %s719_s14 }
  0x41   : > { %p34_p13 = scmp.ge.s32.totalorder %s32_s9, 2  ;;  %p48_p9 = scmp.ne.s32.totalorder %s719_s14, %s715_s13 }
  0x42   : > { %p49_p1 = scmp.eq.s32.totalorder %s731_s17, 0  ;;  %p497_p4 = scmp.lt.s32.totalorder %s731_s17, 2 }
  0x43   : > { %s1035_s9 = smov (%p34_p13, %s32_s9), 0  ;;  %p1021_p6 = scmp.ne.s32.totalorder %s1016_s21, 0 }
  0x44   : > { %p50_p2 = por %p49_p1, %p48_p9  ;;  %s36_s11 = ssub.s32 %s727_s16, %s1035_s9 }
  0x45   : > { %p886_p8 = por %p1021_p6, %p48_p9  ;;  %s170_s18 = sand.u32 1, %s719_s14  }
  0x46   : > { %p39_p12 = scmp.eq.s32.totalorder %s36_s11, 0  ;;  %s449_s28 = sshll.u32 %s170_s18, 3 }
  0x47   : > { %s450_s19 = sshll.u32 %s727_s16, 7  ;;  %s174_s21 = scalar_lea.vmem [#allocation2], %s449_s28 }
  0x48   : > { %s895_s25 = scalar_select %p39_p12, %s719_s14, %s41_s10  }
  0x49   : > { %s900_s4 = scalar_lea.hbm %s1007_s0, %s450_s19  ;;  %s182_s5 = sshll.u32 %s174_s21, 4  ;;  %s908_s5 = int_to_ptr.vmem [resolvable:$true] %s182_s5 }
  0x4a   : > { %p904_p11 = pnand %p497_p4, %p50_p2  ;;  %s171_s26 = scalar_lea.sflag [#allocation3], %s170_s18 }
  0x4b   : > { %s615_s7 = scalar_lea.hbm %s900_s4, 128  ;;  %s620_s11 = scalar_lea.hbm %s1007_s0, 256 }
  0x4c   : > { %p616_p0 = scmp.ne.s32.totalorder %s900_s4, %s615_s7  ;;  %p617_p3 = pneg %p904_p11 }
  0x4d   : > { %p621_p10 = scmp.lt.u32.totalorder %s900_s4, %s1007_s0  ;;  %p622_p13 = scmp.lt.u32.totalorder %s620_s11, %s615_s7 }
  0x4e   : > { %p618_p5 = pnand %p617_p3, %p616_p0  ;;  %p624_p1 = scmp.lt.u32.totalorder %s615_s7, %s900_s4 }
  0x4f   : > { %p623_p9 = por %p622_p13, %p621_p10 }
  0x50   : > { %p619_p7 = pneg %p618_p5 }
  0x51   : > { %p625_p4 = por %p624_p1, %p623_p9 }
  0x53   : > { %p626_p2 = pnand %p625_p4, %p619_p7 }
  0x55   : > { %629 = shalt.err (!%p626_p2)
}
  0x56   : > { %s630_s18 = scalar_lea.vmem %s908_s5, 128  ;;  %s735_s27 = smov [#allocation2]  }
  0x57   : > { %p631_p6 = scmp.ne.s32.totalorder %s908_s5, %s630_s18  ;;  %s635_s30 = sshll.u32 %s735_s27, 4  ;;  %s636_s30 = int_to_ptr.vmem [resolvable:$false] %s635_s30 }
  0x58   : > { %s637_s21 = scalar_lea.vmem %s636_s30, 256  ;;  %p638_p5 = scmp.lt.s32.totalorder %s908_s5, %s636_s30 }
  0x59   : > { %p633_p12 = pnand %p631_p6, %p617_p3  ;;  %p639_p10 = scmp.lt.s32.totalorder %s637_s21, %s630_s18 }
  0x5b   : > { %p634_p0 = pneg %p633_p12  ;;  %p640_p13 = por %p639_p10, %p638_p5 }
  0x5d   : > { %p641_p9 = pnand %p640_p13, %p634_p0 }
  0x5f   : > { %644 = shalt.err (!%p641_p9)
}
  0x60   : > { %490 = dma.hbm_to_vmem [thread:$0]  (!%p904_p11), %s900_s4, 128, %s908_s5, %s171_s26  }
  0x61   : > { %p1024_p7 = scmp.ne.s32.totalorder %s1019_s24, 0 }
  0x62   : > { %s938_s7 = sand.u32 (!%p1024_p7), 1, %s715_s13   ;;  %p1025_p3 = scmp.ne.s32.totalorder (!%p1024_p7), %s1017_s22, 0 }
  0x63   : > { %191 = sbr.rel (%p1024_p7) target bundleno = 395 (0x18b), region = 32  ;;  %s452_s8 = sshll.u32 (!%p1024_p7), %s938_s7, 3 }
  0x64   : > { %s194_s10 = scalar_lea.sflag (!%p1024_p7), [#allocation3], %s938_s7  ;;  %s197_s11 = scalar_lea.vmem (!%p1024_p7), [#allocation2], %s452_s8 }
  0x6a   : > { %698 = dma.done.wait (%p1025_p3), %s194_s10, 128  }
  0x6b   : > { %700 = vsyncadd (%p1025_p3), %s194_s10, 4294967168  ;;  %p1026_p11 = scmp.ne.s32.totalorder %s1015_s20, 0 }
  0x6d   : > { %702 = dma.done.wait (%p1026_p11), [#allocation6], 256  }
  0x6e   : > { %704 = vsyncadd (%p1026_p11), [#allocation6], 4294967040  ;;  %v736_v0 = vmov 0.0   ;;  %vm737_vm0 = vmmov 0   ;;  %v738_v1 = vmov 0   ;;  %vm236_vm1 = vcmask 64512  }
  0x6f   : > { %463 = vmatprep.subr.mxu0 %v736_v0  ;;  %465 = vmatprep.mubr.msk.f32.mxu0 %vm737_vm0, %v736_v0  ;;  %v228_v2 = vld [vmem:[%s197_s11] sm:$0xff]  ;;  %v229_v3 = vld [vmem:[#allocation5] sm:$0xff]  ;;  %v230_v4 = vld [vmem:[#allocation7] sm:$0xff]  ;;  %s458_s20 = sshll.u32 %s723_s15, 7  ;;  %s227_s22 = scalar_lea.vmem [#allocation8], %s452_s8 }
  0x70   : > { %554 = vset.pattern.permute.xlu0 %v738_v1  ;;  %464 = vmatpush3.msra.mxu0 %v228_v2  ;;  %s344_s24 = sshll.u32 %s227_s22, 4  ;;  %s958_s6 = scalar_lea.hbm %s1010_s3, %s458_s20  ;;  %s960_s24 = int_to_ptr.vmem [resolvable:$true] %s344_s24 }
  0x71   : > { %233 = vperm.xlu0 %554, %v230_v4   ;;  %466 = vmatmul.mubr.msk.f32.vlgmr.msra.gmra.mrb[0].mxu0 %vm236_vm1, %v229_v3  ;;  %s330_s26 = scalar_lea.sflag [#allocation4], %s938_s7  ;;  %s645_s28 = scalar_lea.vmem %s960_s24, 128 }
  0x72   : > { %p646_p1 = scmp.ne.s32.totalorder %s960_s24, %s645_s28  ;;  %s739_s15 = smov [#allocation8]  }
  0x73   : > { %s649_s19 = sshll.u32 %s739_s15, 4  ;;  %s650_s19 = int_to_ptr.vmem [resolvable:$false] %s649_s19 }
  0x74   : > { %p647_p4 = pnand %p646_p1, %p886_p8  ;;  %s651_s18 = scalar_lea.vmem %s650_s19, 256 }
  0x75   : > { %p652_p6 = scmp.lt.s32.totalorder %s960_s24, %s650_s19  ;;  %p653_p12 = scmp.lt.s32.totalorder %s651_s18, %s645_s28 }
  0x76   : > { %p648_p2 = pneg %p647_p4 }
  0x77   : > { %p654_p0 = por %p653_p12, %p652_p6 }
  0x79   : > { %p655_p5 = pnand %p654_p0, %p648_p2 }
  0xf0   : > { %v234_v5 = vpop.permute.xlu0 %233 }
 0x144   : > { %v306_v6 = vpop.f32.mrb[0].mxu0 }
 0x145   : > { %v307_v7 = vadd.f32 %v306_v6, %v234_v5  ;;  %v467_v8 = vpop.f32.mrb[1].mxu0 }
 0x147   : > { %v310_v9 = vrot.slane %v307_v7, 4 }
 0x149   : > { %v311_v10 = vmax.f32 %v307_v7, %v310_v9 }
 0x14b   : > { %v312_v11 = vrot.slane %v311_v10, 2 }
 0x14d   : > { %v313_v12 = vmax.f32 %v311_v10, %v312_v11 }
 0x14f   : > { %v314_v13 = vrot.slane %v313_v12, 1 }
 0x151   : > { %v315_v14 = vmax.f32 %v313_v12, %v314_v13 }
 0x153   : > { %v316_v15 = vsub.f32 %v307_v7, %v315_v14 }
 0x155   : > { %v317_v16 = vmul.f32 1.442695, %v316_v15 }
 0x157   : > { %555 = vpow2.f32 %v317_v16 }
 0x161   : > { %v556_v17 = vpop.eup %555 }
 0x162   : > { %v319_v18 = vrot.slane %v556_v17, 4 }
 0x164   : > { %v320_v19 = vadd.f32 %v556_v17, %v319_v18 }
 0x166   : > { %v321_v20 = vrot.slane %v320_v19, 2 }
 0x168   : > { %v322_v21 = vadd.f32 %v321_v20, %v320_v19 }
 0x16a   : > { %v323_v22 = vrot.slane %v322_v21, 1 }
 0x16c   : > { %v324_v23 = vadd.f32 %v323_v22, %v322_v21 }
 0x16e   : > { %557 = vrcp.f32 %v324_v23 }
 0x178   : > { %v558_v24 = vpop.eup %557 }
 0x179   : > { %v326_v25 = vmul.f32 %v558_v24, %v556_v17 }
 0x17b   : > { %v327_v26 = vmul.f32 %v326_v25, %v228_v2 }
 0x17d   : > { %328 = vst [vmem:[%s227_s22] sm:$0xff] %v327_v26 }
 0x17e   : > { %658 = shalt.err (!%p655_p5)
}
 0x17f   : > { %s659_s27 = scalar_lea.hbm %s958_s6, 128  ;;  %s663_s7 = scalar_lea.hbm %s1010_s3, 256 }
 0x180   : > { %p660_p10 = scmp.ne.s32.totalorder %s958_s6, %s659_s27  ;;  %p664_p7 = scmp.lt.u32.totalorder %s958_s6, %s1010_s3 }
 0x181   : > { %p665_p3 = scmp.lt.u32.totalorder %s663_s7, %s659_s27  ;;  %p667_p1 = scmp.lt.u32.totalorder %s659_s27, %s958_s6 }
 0x182   : > { %p661_p13 = pnand %p660_p10, %p886_p8 }
 0x183   : > { %p666_p11 = por %p665_p3, %p664_p7 }
 0x184   : > { %p662_p9 = pneg %p661_p13 }
 0x185   : > { %p668_p4 = por %p667_p1, %p666_p11 }
 0x187   : > { %p669_p2 = pnand %p668_p4, %p662_p9 }
 0x189   : > { %672 = shalt.err (!%p669_p2)
}
 0x18a   : > { %478 = dma.vmem_to_hbm [thread:$0]  (%p886_p8), %s960_s24, 128, %s958_s6, %s330_s26  }
 0x18b PF: > { %s356_s11 = sand.u32 1, %s711_s12   ;;  %p1027_p6 = scmp.ne.s32.totalorder %s1018_s23, 0 }
 0x18c   : > { %p1028_p12 = scmp.ge.s32.totalorder %s731_s17, 2  ;;  %s357_s20 = scalar_lea.sflag [#allocation4], %s356_s11 }
 0x18e   : > { %p492_p0 = pnand %p1028_p12, %p1027_p6 }
 0x190   : > { %706 = dma.done.wait (!%p492_p0), %s357_s20, 128  }
 0x191   : > { %708 = vsyncadd (!%p492_p0), %s357_s20, 4294967168  ;;  %s20_s17 = sadd.s32 1, %s731_s17   ;;  %s1029_s12 = smov %s715_s13 }
 0x192   : > { %p17_p5 = scmp.ge.s32.totalorder %s20_s17, 4   ;;  %s1030_s13 = smov %s719_s14 }
 0x193   : > { %s1031_s14 = smov %s895_s25  ;;  %s1032_s15 = smov %s727_s16 }
 0x194   : > { %s1033_s16 = smov %s1035_s9  ;;  %19 = sbr.rel (!%p17_p5) target bundleno = 7 (0x7), region = 85 }
 0x19b   :  { %362 = vsyncpa [#allocation3], 1 }
 0x19c   :  { %364 = vsyncpa [#allocation3 + $0x1], 1 }
 0x19d   :  { %365 = vsyncpa [#allocation6], 1 }
 0x19e   :  { %366 = vsyncpa [#allocation4], 1 }
 0x19f   :  { %368 = vsyncpa [#allocation4 + $0x1], 1 }

</bundles_post_ra>
